<compile_context>
chip_gen: v7x
topology: tpu7x:2x2x1
jax: 0.10.0
libtpu: 0.0.40
codegen_flags: <defaults>
</compile_context>

<pallas_src>
import jax
import jax.numpy as jnp
from jax.experimental import pallas as pl
from jax.experimental.pallas import tpu as pltpu

LATENT_DIM = 2
HIDDEN1 = 32
HIDDEN2 = 64
OUTPUT_DIM = 16  # small output_dim for the example


def _decoder_kernel(z_ref, w1_ref, b1_ref, w2_ref, b2_ref, w3_ref, b3_ref,
                    out_ref):
    # z_ref:  (latent_dim, Bt)      feature-major batch tile
    # w*_ref: (out_f, in_f)         PyTorch weight layout
    # b*_ref: (out_f, 1)            broadcasts over the lane (batch) axis
    zt = z_ref[...]                          # (ld, Bt)
    w1 = w1_ref[...]                         # (H1, ld)

    # ---- fc1 on the VPU (K = latent_dim = 2; MXU would be ~1.5% utilized) --
    ld = zt.shape[0]
    acc = w1[:, 0:1] * zt[0:1, :]            # (H1, Bt) outer-product term
    for k in range(1, ld):                   # static, tiny loop
        acc = acc + w1[:, k:k + 1] * zt[k:k + 1, :]
    h1 = jnp.maximum(acc + b1_ref[...], 0.0)

    # ---- fc2 + relu on the MXU (N = Bt >= 128) -----------------------------
    h2 = jnp.dot(w2_ref[...], h1,
                 preferred_element_type=jnp.float32) + b2_ref[...]
    h2 = jnp.maximum(h2, 0.0)

    # ---- fc3 (no activation); lane-dense store -----------------------------
    out_ref[...] = (jnp.dot(w3_ref[...], h2,
                            preferred_element_type=jnp.float32)
                    + b3_ref[...]).astype(out_ref.dtype)


def decoder_forward(z, params, *, batch_tile=512):
    """Run the 3-layer MLP decoder on TPU via Pallas.

    z: (B, latent_dim) f32
    params: dict with w1 (32, latent), b1 (32, 1), w2 (64, 32), b2 (64, 1),
            w3 (out, 64), b3 (out, 1)   -- all f32, PyTorch layout.
    """
    B, ld = z.shape
    out_dim = params["w3"].shape[0]

    assert batch_tile % 128 == 0, "batch_tile must be a multiple of 128 lanes"
    bt = batch_tile
    if B <= bt:
        # Small batch: use two 128-aligned tiles so dual-TensorCore chips
        # (v7x) still get >= 2 parallel grid steps.
        bt = max(128, (((B + 1) // 2) + 127) // 128 * 128)
        grid_n = 2
    else:
        grid_n = pl.cdiv(B, bt)
    B_pad = grid_n * bt

    # Feature-major slab, zero-padded on the batch (lane) axis.
    zt = jnp.zeros((ld, B_pad), jnp.float32).at[:, :B].set(z.T)

    in_specs = [
        pl.BlockSpec((ld, bt), lambda i: (0, i)),          # z tile (lane=batch)
        pl.BlockSpec(params["w1"].shape, lambda i: (0, 0)),  # resident weights
        pl.BlockSpec(params["b1"].shape, lambda i: (0, 0)),
        pl.BlockSpec(params["w2"].shape, lambda i: (0, 0)),
        pl.BlockSpec(params["b2"].shape, lambda i: (0, 0)),
        pl.BlockSpec(params["w3"].shape, lambda i: (0, 0)),
        pl.BlockSpec(params["b3"].shape, lambda i: (0, 0)),
    ]
    out_spec = pl.BlockSpec((out_dim, bt), lambda i: (0, i))  # lane-dense out

    out_t = pl.pallas_call(
        _decoder_kernel,
        out_shape=jax.ShapeDtypeStruct((out_dim, B_pad), jnp.float32),
        grid_spec=pltpu.PrefetchScalarGridSpec(
            num_scalar_prefetch=0,
            grid=(grid_n,),
            in_specs=in_specs,
            out_specs=out_spec,
        ),
        compiler_params=pltpu.CompilerParams(
            dimension_semantics=("parallel",),
            vmem_limit_bytes=32 << 20,   # explicit; tiles stay in the low-MiB range
        ),
    )(zt, params["w1"], params["b1"], params["w2"], params["b2"],
      params["w3"], params["b3"])

    # Layout plumbing back to the PyTorch convention (B, out_dim).
    return out_t.T[:B]


def init_decoder_params(key, latent_dim, output_dim):
    """Deterministic init mimicking nn.Linear's U(-1/sqrt(fan_in), 1/sqrt(fan_in)).

    Weights in PyTorch layout (out_features, in_features); biases (out, 1).
    """
    ks = jax.random.split(key, 6)

    def linear(kw, kb, fan_in, fan_out):
        bound = 1.0 / jnp.sqrt(jnp.float32(fan_in))
        w = jax.random.uniform(kw, (fan_out, fan_in), jnp.float32, -bound, bound)
        b = jax.random.uniform(kb, (fan_out, 1), jnp.float32, -bound, bound)
        return w, b

    w1, b1 = linear(ks[0], ks[1], latent_dim, HIDDEN1)
    w2, b2 = linear(ks[2], ks[3], HIDDEN1, HIDDEN2)
    w3, b3 = linear(ks[4], ks[5], HIDDEN2, output_dim)
    return {"w1": w1, "b1": b1, "w2": w2, "b2": b2, "w3": w3, "b3": b3}


def decoder_ref(z, p):
    """Pure-JAX reference for verification (batch-major math)."""
    h1 = jax.nn.relu(z @ p["w1"].T + p["b1"].T)
    h2 = jax.nn.relu(h1 @ p["w2"].T + p["b2"].T)
    return h2 @ p["w3"].T + p["b3"].T


if __name__ == "__main__":
    key = jax.random.PRNGKey(0)
    k_params, k_z = jax.random.split(key)

    params = init_decoder_params(k_params, LATENT_DIM, OUTPUT_DIM)

    # Small case (pads to two 128-wide tiles).
    batch = 8
    z = jax.random.normal(k_z, (batch, LATENT_DIM), jnp.float32)
    out = jax.block_until_ready(decoder_forward(z, params))
    ref = decoder_ref(z, params)
    assert out.shape == (batch, OUTPUT_DIM)
    assert jnp.allclose(out, ref, atol=1e-5, rtol=1e-5), "mismatch vs reference"

    # Larger, non-multiple batch (exercises padding + multi-tile grid).
    batch2 = 1000
    z2 = jax.random.normal(jax.random.PRNGKey(1), (batch2, LATENT_DIM),
                           jnp.float32)
    out2 = jax.block_until_ready(decoder_forward(z2, params))
    ref2 = decoder_ref(z2, params)
    assert out2.shape == (batch2, OUTPUT_DIM)
    assert jnp.allclose(out2, ref2, atol=1e-5, rtol=1e-5), "mismatch (large B)"

    print("KERNEL_OK")
</pallas_src>

<mosaic_0001>
module attributes {stable_mosaic.version = 11 : i64} {
  func.func @_decoder_kernel(%arg0: i32, %arg1: memref<2x128xf32, #tpu.memory_space<vmem>>, %arg2: memref<32x2xf32, #tpu.memory_space<vmem>>, %arg3: memref<32x1xf32, #tpu.memory_space<vmem>>, %arg4: memref<64x32xf32, #tpu.memory_space<vmem>>, %arg5: memref<64x1xf32, #tpu.memory_space<vmem>>, %arg6: memref<16x64xf32, #tpu.memory_space<vmem>>, %arg7: memref<16x1xf32, #tpu.memory_space<vmem>>, %arg8: memref<16x128xf32, #tpu.memory_space<vmem>>) attributes {dimension_semantics = [#tpu.dimension_semantics<parallel>], iteration_bounds = array<i64: 2>, scalar_prefetch = 0 : i64, scratch_operands = 0 : i64, tpu.core_type = #tpu.core_type<tc>, window_params = [{transform_indices = @transform_0, window_bounds = array<i64: 2, 128>}, {pipeline_mode = #tpu.pipeline_mode<synchronous>, transform_indices = @transform_1, window_bounds = array<i64: 32, 2>}, {pipeline_mode = #tpu.pipeline_mode<synchronous>, transform_indices = @transform_2, window_bounds = array<i64: 32, 1>}, {pipeline_mode = #tpu.pipeline_mode<synchronous>, transform_indices = @transform_3, window_bounds = array<i64: 64, 32>}, {pipeline_mode = #tpu.pipeline_mode<synchronous>, transform_indices = @transform_4, window_bounds = array<i64: 64, 1>}, {pipeline_mode = #tpu.pipeline_mode<synchronous>, transform_indices = @transform_5, window_bounds = array<i64: 16, 64>}, {pipeline_mode = #tpu.pipeline_mode<synchronous>, transform_indices = @transform_6, window_bounds = array<i64: 16, 1>}, {transform_indices = @transform_7, window_bounds = array<i64: 16, 128>}]} {
    %c0 = arith.constant 0 : index
    %c0_0 = arith.constant 0 : index
    %0 = vector.load %arg1[%c0, %c0_0] : memref<2x128xf32, #tpu.memory_space<vmem>>, vector<2x128xf32>
    %c0_1 = arith.constant 0 : index
    %c0_2 = arith.constant 0 : index
    %1 = vector.load %arg2[%c0_1, %c0_2] : memref<32x2xf32, #tpu.memory_space<vmem>>, vector<32x2xf32>
    %2 = vector.extract_strided_slice %1 {offsets = [0, 0], sizes = [32, 1], strides = [1, 1]} : vector<32x2xf32> to vector<32x1xf32>
    %3 = vector.extract_strided_slice %0 {offsets = [0, 0], sizes = [1, 128], strides = [1, 1]} : vector<2x128xf32> to vector<1x128xf32>
    %4 = vector.broadcast %2 : vector<32x1xf32> to vector<32x128xf32>
    %5 = vector.broadcast %3 : vector<1x128xf32> to vector<32x128xf32>
    %6 = arith.mulf %4, %5 : vector<32x128xf32>
    %7 = vector.extract_strided_slice %1 {offsets = [0, 1], sizes = [32, 1], strides = [1, 1]} : vector<32x2xf32> to vector<32x1xf32>
    %8 = vector.extract_strided_slice %0 {offsets = [1, 0], sizes = [1, 128], strides = [1, 1]} : vector<2x128xf32> to vector<1x128xf32>
    %9 = vector.broadcast %7 : vector<32x1xf32> to vector<32x128xf32>
    %10 = vector.broadcast %8 : vector<1x128xf32> to vector<32x128xf32>
    %11 = arith.mulf %9, %10 : vector<32x128xf32>
    %12 = arith.addf %6, %11 : vector<32x128xf32>
    %c0_3 = arith.constant 0 : index
    %c0_4 = arith.constant 0 : index
    %13 = vector.load %arg3[%c0_3, %c0_4] : memref<32x1xf32, #tpu.memory_space<vmem>>, vector<32x1xf32>
    %14 = vector.broadcast %13 : vector<32x1xf32> to vector<32x128xf32>
    %15 = arith.addf %12, %14 : vector<32x128xf32>
    %cst = arith.constant 0.000000e+00 : f32
    %16 = vector.broadcast %cst : f32 to vector<32x128xf32>
    %17 = arith.maximumf %15, %16 : vector<32x128xf32>
    %c0_5 = arith.constant 0 : index
    %c0_6 = arith.constant 0 : index
    %18 = vector.load %arg4[%c0_5, %c0_6] : memref<64x32xf32, #tpu.memory_space<vmem>>, vector<64x32xf32>
    %cst_7 = arith.constant dense<0.000000e+00> : vector<64x128xf32>
    %19 = tpu.matmul %18, %17, %cst_7 {dimension_numbers = #tpu.dot_dimension_numbers<[1], [0], [0], [1], [0, 0, 1, 1], [], []>} : vector<64x32xf32>, vector<32x128xf32>, vector<64x128xf32> -> vector<64x128xf32>
    %c0_8 = arith.constant 0 : index
    %c0_9 = arith.constant 0 : index
    %20 = vector.load %arg5[%c0_8, %c0_9] : memref<64x1xf32, #tpu.memory_space<vmem>>, vector<64x1xf32>
    %21 = vector.broadcast %20 : vector<64x1xf32> to vector<64x128xf32>
    %22 = arith.addf %19, %21 : vector<64x128xf32>
    %cst_10 = arith.constant 0.000000e+00 : f32
    %23 = vector.broadcast %cst_10 : f32 to vector<64x128xf32>
    %24 = arith.maximumf %22, %23 : vector<64x128xf32>
    %c0_11 = arith.constant 0 : index
    %c0_12 = arith.constant 0 : index
    %25 = vector.load %arg6[%c0_11, %c0_12] : memref<16x64xf32, #tpu.memory_space<vmem>>, vector<16x64xf32>
    %cst_13 = arith.constant dense<0.000000e+00> : vector<16x128xf32>
    %26 = tpu.matmul %25, %24, %cst_13 {dimension_numbers = #tpu.dot_dimension_numbers<[1], [0], [0], [1], [0, 0, 1, 1], [], []>} : vector<16x64xf32>, vector<64x128xf32>, vector<16x128xf32> -> vector<16x128xf32>
    %c0_14 = arith.constant 0 : index
    %c0_15 = arith.constant 0 : index
    %27 = vector.load %arg7[%c0_14, %c0_15] : memref<16x1xf32, #tpu.memory_space<vmem>>, vector<16x1xf32>
    %28 = vector.broadcast %27 : vector<16x1xf32> to vector<16x128xf32>
    %29 = arith.addf %26, %28 : vector<16x128xf32>
    %c0_16 = arith.constant 0 : index
    %c0_17 = arith.constant 0 : index
    %30 = vector.load %arg8[%c0_16, %c0_17] : memref<16x128xf32, #tpu.memory_space<vmem>>, vector<16x128xf32>
    tpu.vector_store %arg8[%c0_16, %c0_17], %29 {strides = array<i32>} : memref<16x128xf32, #tpu.memory_space<vmem>>, vector<16x128xf32>,
    return
  }
  func.func @transform_0(%arg0: i32) -> (i32, i32) {
    %c0_i32 = arith.constant 0 : i32
    %c0_i32_0 = arith.constant 0 : i32
    return %c0_i32, %arg0 : i32, i32
  }
  func.func @transform_1(%arg0: i32) -> (i32, i32) {
    %c0_i32 = arith.constant 0 : i32
    %c0_i32_0 = arith.constant 0 : i32
    %c0_i32_1 = arith.constant 0 : i32
    return %c0_i32, %c0_i32_0 : i32, i32
  }
  func.func @transform_2(%arg0: i32) -> (i32, i32) {
    %c0_i32 = arith.constant 0 : i32
    %c0_i32_0 = arith.constant 0 : i32
    %c0_i32_1 = arith.constant 0 : i32
    return %c0_i32, %c0_i32_0 : i32, i32
  }
  func.func @transform_3(%arg0: i32) -> (i32, i32) {
    %c0_i32 = arith.constant 0 : i32
    %c0_i32_0 = arith.constant 0 : i32
    %c0_i32_1 = arith.constant 0 : i32
    return %c0_i32, %c0_i32_0 : i32, i32
  }
  func.func @transform_4(%arg0: i32) -> (i32, i32) {
    %c0_i32 = arith.constant 0 : i32
    %c0_i32_0 = arith.constant 0 : i32
    %c0_i32_1 = arith.constant 0 : i32
    return %c0_i32, %c0_i32_0 : i32, i32
  }
  func.func @transform_5(%arg0: i32) -> (i32, i32) {
    %c0_i32 = arith.constant 0 : i32
    %c0_i32_0 = arith.constant 0 : i32
    %c0_i32_1 = arith.constant 0 : i32
    return %c0_i32, %c0_i32_0 : i32, i32
  }
  func.func @transform_6(%arg0: i32) -> (i32, i32) {
    %c0_i32 = arith.constant 0 : i32
    %c0_i32_0 = arith.constant 0 : i32
    %c0_i32_1 = arith.constant 0 : i32
    return %c0_i32, %c0_i32_0 : i32, i32
  }
  func.func @transform_7(%arg0: i32) -> (i32, i32) {
    %c0_i32 = arith.constant 0 : i32
    %c0_i32_0 = arith.constant 0 : i32
    return %c0_i32, %arg0 : i32, i32
  }
}

</mosaic_0001>

<bundles_post_ra>
// kernel: tpu_custom_call.1
= control target key start
LH: loop header
LB: loop body
LE: loop exit
PB: predicated region body
PF: predicated region fallthrough
CT: control target
= control target key end

     0   :  { %12 = vsyncpa [#allocation3], 0  ;;  %s1196_s0 = inlined_call_operand.vmem [shape: f32[2,256], index: 0, kind: input, shape index: {}]   ;;  %s1197_s1 = inlined_call_operand.vmem [shape: f32[32,2], index: 1, kind: input, shape index: {}]   ;;  %s1198_s2 = inlined_call_operand.vmem [shape: f32[32,1], index: 2, kind: input, shape index: {}]   ;;  %s1199_s3 = inlined_call_operand.vmem [shape: f32[64,32], index: 3, kind: input, shape index: {}]   ;;  %s1200_s4 = inlined_call_operand.vmem [shape: f32[64,1], index: 4, kind: input, shape index: {}]   ;;  %s1201_s5 = inlined_call_operand.vmem [shape: f32[16,64], index: 5, kind: input, shape index: {}]   ;;  %s1202_s6 = inlined_call_operand.vmem [shape: f32[16,1], index: 6, kind: input, shape index: {}]   ;;  %s1203_s7 = inlined_call_operand.hbm [shape: f32[16,256], index: 7, kind: output, shape index: {}]  }
   0x1   :  { %14 = vsyncpa [#allocation3 + $0x1], 0  ;;  %s999_s24 = smov 0   ;;  %s1001_s25 = smov 0  }
   0x2   :  { %s1003_s26 = smov 0   ;;  %s1005_s27 = smov 0  }
   0x3 LB: > { %s1020_s28 = sadd.s32 4294967295, %s951_s27   ;;  %s734_s29 = sadd.s32 4294967294, %s951_s27   ;;  %s951_s27 = sphi %s1005_s27, %s1209_s27   ;;  %s947_s26 = sphi %s1003_s26, %s1208_s26   ;;  %s943_s25 = sphi %s1001_s25, %s1207_s25   ;;  %s939_s24 = sphi %s999_s24, %s1206_s24  }
   0x4   : > { %s1024_s30 = sadd.s32 1, %s951_s27   ;;  %s179_s8 = sadd.s32 1, %s947_s26 }
   0x5   : > { %s176_s9 = ssub.s32 %s951_s27, %s1024_s30  ;;  %p189_p0 = scmp.ne.s32.totalorder %s947_s26, %s943_s25 }
   0x6   : > { %p177_p1 = scmp.eq.s32.totalorder %s176_s9, 0  ;;  %p190_p2 = scmp.eq.s32.totalorder %s1020_s28, 1 }
   0x7   : > { %p195_p3 = scmp.ne.s32.totalorder %s943_s25, %s939_s24  ;;  %p196_p4 = scmp.eq.s32.totalorder %s734_s29, 1 }
   0x8   : > { %s1035_s10 = scalar_select %p177_p1, %s947_s26, %s179_s8  }
   0x9   : > { %p1037_p5 = por %p190_p2, %p189_p0  ;;  %p1041_p6 = por %p196_p4, %p195_p3 }
   0xa   : > { %p737_p7 = scmp.ge.s32.totalorder %s951_s27, 1  ;;  %p239_p8 = scmp.lt.s32.totalorder %s951_s27, 3 }
   0xc   : > { %p240_p9 = pnand %p737_p7, %p239_p8 }
   0xd   : > { %v277_v0 = vld [vmem:[%s1197_s1 + $0x10] sm:$0xff] (!%p240_p9)  ;;  %v275_v1 = vld [vmem:[%s1197_s1] sm:$0xff] (!%p240_p9)  ;;  %v953_v2 = vmov (!%p240_p9), 1   ;;  %v276_v3 = vld [vmem:[%s1197_s1 + $0x8] sm:$0xff] (!%p240_p9)  ;;  %v954_v4 = vmov (!%p240_p9), 0   ;;  %vm423_vm0 = vcmask (!%p240_p9), 261120   ;;  %v299_v21 = vlaneseq (!%p240_p9) }
   0xe   : > { %243 = sbr.rel (%p240_p9) target bundleno = 646 (0x286), region = 48  ;;  %885 = vset.pattern.permute.xlu0 (!%p240_p9), %v953_v2  ;;  %883 = vset.pattern.permute.xlu1 (!%p240_p9), %v953_v2  ;;  %v278_v5 = vld [vmem:[%s1197_s1 + $0x18] sm:$0xff] (!%p240_p9)  ;;  %v336_v6 = vld [vmem:[%s1198_s2 + $0x8] sm:$0xff] (!%p240_p9)  ;;  %v335_v7 = vld [vmem:[%s1198_s2] sm:$0xff] (!%p240_p9)  ;;  %p270_p10 = scmp.lt.s32.totalorder (!%p240_p9), %s1020_s28, 1  ;;  %vm575_vm1 = vcmask (!%p240_p9), 523264  }
   0xf   : > { %316 = vperm.xlu0 (!%p240_p9), %885, %v277_v0   ;;  %308 = vperm.xlu1 (!%p240_p9), %883, %v275_v1   ;;  %v375_v8 = vld [vmem:[%s1200_s4] sm:$0xff] (!%p240_p9)  ;;  %v337_v9 = vld [vmem:[%s1198_s2 + $0x10] sm:$0xff] (!%p240_p9)  ;;  %v338_v11 = vld [vmem:[%s1198_s2 + $0x18] sm:$0xff] (!%p240_p9)  ;;  %v300_v24 = vshrl.u32 (!%p240_p9), %v299_v21, 7  ;;  %s267_s18 = sand.u32 (!%p240_p9), 1, %s943_s25   ;;  %s751_s22 = sshll.u32 (!%p240_p9), %s1020_s28, 7 }
  0x10   : > { %v377_v10 = vld [vmem:[%s1200_s4 + $0x10] sm:$0xff] (!%p240_p9)  ;;  %v379_v12 = vld [vmem:[%s1200_s4 + $0x20] sm:$0xff] (!%p240_p9)  ;;  %v376_v13 = vld [vmem:[%s1200_s4 + $0x8] sm:$0xff] (!%p240_p9)  ;;  %s738_s19 = sshll.u32 (!%p240_p9), %s267_s18, 4  ;;  %s1153_s8 = scalar_lea.hbm (!%p240_p9), %s1203_s7, %s751_s22 }
  0x11   : > { %v381_v14 = vld [vmem:[%s1200_s4 + $0x30] sm:$0xff] (!%p240_p9)  ;;  %v378_v15 = vld [vmem:[%s1200_s4 + $0x18] sm:$0xff] (!%p240_p9)  ;;  %v563_v16 = vld [vmem:[%s1202_s6] sm:$0xff] (!%p240_p9)  ;;  %v301_v27 = vsub.s32 (!%p240_p9), 0, %v300_v24  ;;  %v325_v28 = vsub.s32 (!%p240_p9), 1, %v300_v24  ;;  %s269_s20 = scalar_lea.vmem (!%p240_p9), [#allocation2], %s738_s19 }
  0x12   : > { %v367_v17 = vld [vmem:[%s1199_s3] sm:$0xff] (!%p240_p9)  ;;  %v380_v18 = vld [vmem:[%s1200_s4 + $0x28] sm:$0xff] (!%p240_p9)  ;;  %v382_v19 = vld [vmem:[%s1200_s4 + $0x38] sm:$0xff] (!%p240_p9)  ;;  %s672_s21 = sshll.u32 (!%p240_p9), %s269_s20, 4  ;;  %s1155_s9 = scalar_lea.sflag (!%p240_p9), [#allocation3], %s267_s18  ;;  %s1148_s21 = int_to_ptr.vmem [resolvable:$true] %s672_s21 }
  0x13   : > { %886 = vset.pattern.permute.xlu0 (!%p240_p9), %v954_v4  ;;  %312 = vperm.xlu1 (!%p240_p9), %883, %v276_v3   ;;  %v564_v20 = vld [vmem:[%s1202_s6 + $0x8] sm:$0xff] (!%p240_p9)  ;;  %v369_v63 = vld [vmem:[%s1199_s3 + $0x10] sm:$0xff] (!%p240_p9) }
  0x14   : > { %281 = vperm.xlu0 (!%p240_p9), %886, %v275_v1   ;;  %784 = vmatprep.mubr.msk.f32.mxu0 (!%p240_p9), %vm423_vm0, %v367_v17  ;;  %v368_v62 = vld [vmem:[%s1199_s3 + $0x8] sm:$0xff] (!%p240_p9)  ;;  %v371_v1 = vld [vmem:[%s1199_s3 + $0x20] sm:$0xff] (!%p240_p9) }
  0x15   : > { %s271_s23 = scalar_select %p270_p10, %s1020_s28, 1 }
  0x16   : > { %s889_s28 = scalar_lea.vmem %s1148_s21, 256 }
  0x17   : > { %884 = vset.pattern.permute.xlu1 %v954_v4  ;;  %s739_s29 = sshll.u32 %s271_s23, 1  ;;  %p890_p11 = scmp.ne.s32.totalorder %s1148_s21, %s889_s28 }
  0x18   : > { %286 = vperm.xlu0 %886, %v276_v3   ;;  %296 = vperm.xlu1 %884, %v278_v5   ;;  %s273_s13 = scalar_lea.vmem %s1196_s0, %s739_s29  ;;  %v373_v3 = vld [vmem:[%s1199_s3 + $0x30] sm:$0xff] }
  0x19   : > { %v274_v29 = vld [vmem:[%s273_s13] sm:$0x3]  ;;  %p891_p12 = pnand %p890_p11, %p1037_p5  ;;  %s955_s13 = smov [#allocation2]  }
  0x1a   : > { %v302_v32 = vrot.slane %v274_v29, %v301_v27  ;;  %v326_v33 = vrot.slane %v274_v29, %v325_v28  ;;  %s893_s14 = sshll.u32 %s955_s13, 4  ;;  %s894_s14 = int_to_ptr.vmem [resolvable:$false] %s893_s14 }
  0x1b   : > { %p892_p13 = pneg %p891_p12  ;;  %s895_s15 = scalar_lea.vmem %s894_s14, 512 }
  0x1c   : > { %291 = vperm.xlu0 %886, %v277_v0   ;;  %887 = vset.pattern.permute.xlu1 %v953_v2  ;;  %v370_v0 = vld [vmem:[%s1199_s3 + $0x18] sm:$0xff]  ;;  %v372_v2 = vld [vmem:[%s1199_s3 + $0x28] sm:$0xff]  ;;  %p896_p0 = scmp.lt.s32.totalorder %s1148_s21, %s894_s14  ;;  %p897_p1 = scmp.lt.s32.totalorder %s895_s15, %s889_s28 }
  0x1d   : > { %320 = vperm.xlu1 %887, %v278_v5   ;;  %v561_v5 = vld [vmem:[%s1201_s5] sm:$0xff] }
  0x1e   : > { %812 = vmatprep.mubr.msk.f32.mxu1 %vm575_vm1, %v561_v5  ;;  %p898_p2 = por %p897_p1, %p896_p0 }
  0x20   : > { %346 = vperm.xlu0 %886, %v336_v6   ;;  %p899_p3 = pnand %p898_p2, %p892_p13 }
  0x21   : > { %888 = vset.pattern.permute.xlu1 %v954_v4  ;;  %v374_v4 = vld [vmem:[%s1199_s3 + $0x38] sm:$0xff] }
  0x22   : > { %341 = vperm.xlu1 %888, %v335_v7  }
  0x24   : > { %385 = vperm.xlu0 %886, %v375_v8  }
  0x26   : > { %351 = vperm.xlu1 %888, %v337_v9  }
  0x28   : > { %395 = vperm.xlu0 %886, %v377_v10  }
  0x2a   : > { %356 = vperm.xlu1 %888, %v338_v11  }
  0x2c   : > { %405 = vperm.xlu0 %886, %v379_v12  }
  0x2e   : > { %390 = vperm.xlu1 %888, %v376_v13  }
  0x30   : > { %415 = vperm.xlu0 %886, %v381_v14  }
  0x32   : > { %400 = vperm.xlu1 %888, %v378_v15  }
  0x34   : > { %567 = vperm.xlu0 %886, %v563_v16  }
  0x36   : > { %410 = vperm.xlu1 %888, %v380_v18  }
  0x3a   : > { %420 = vperm.xlu1 %888, %v382_v19  }
  0x3e   : > { %572 = vperm.xlu1 %888, %v564_v20  }
  0x8e   : > { %v309_v22 = vpop.permute.xlu1 %308  ;;  %v317_v23 = vpop.permute.xlu0 %316 }
  0x8f   : > { %v327_v39 = vmul.f32 %v326_v33, %v309_v22  ;;  %v329_v47 = vmul.f32 %v326_v33, %v317_v23 }
  0x92   : > { %v313_v25 = vpop.permute.xlu1 %312 }
  0x93   : > { %v282_v26 = vpop.permute.xlu0 %281  ;;  %v328_v36 = vmul.f32 %v326_v33, %v313_v25 }
  0x94   : > { %v303_v37 = vmul.f32 %v302_v32, %v282_v26 }
  0x96   : > { %v331_v43 = vadd.f32 %v327_v39, %v303_v37 }
  0x97   : > { %v287_v30 = vpop.permute.xlu0 %286  ;;  %v297_v31 = vpop.permute.xlu1 %296 }
  0x98   : > { %v304_v34 = vmul.f32 %v302_v32, %v287_v30  ;;  %v306_v52 = vmul.f32 %v302_v32, %v297_v31 }
  0x9a   : > { %v332_v40 = vadd.f32 %v328_v36, %v304_v34 }
  0x9b   : > { %v292_v35 = vpop.permute.xlu0 %291 }
  0x9c   : > { %v321_v38 = vpop.permute.xlu1 %320  ;;  %v305_v45 = vmul.f32 %v302_v32, %v292_v35 }
  0x9d   : > { %v330_v48 = vmul.f32 %v326_v33, %v321_v38 }
  0x9e   : > { %v333_v53 = vadd.f32 %v329_v47, %v305_v45 }
  0x9f   : > { %v347_v41 = vpop.permute.xlu0 %346  ;;  %v334_v56 = vadd.f32 %v330_v48, %v306_v52 }
  0xa0   : > { %v360_v42 = vadd.f32 %v347_v41, %v332_v40 }
  0xa1   : > { %v342_v44 = vpop.permute.xlu1 %341 }
  0xa2   : > { %v359_v46 = vadd.f32 %v342_v44, %v331_v43  ;;  %v364_v49 = vmax.f32 %v360_v42, 0.0  ;;  %v562_v42 = vld [vmem:[%s1201_s5 + $0x8] sm:$0xff] }
  0xa3   : > { %v386_v7 = vpop.permute.xlu0 %385 }
  0xa4   : > { %v363_v50 = vmax.f32 %v359_v46, 0.0 }
  0xa5   : > { %v352_v51 = vpop.permute.xlu1 %351 }
  0xa6   : > { %v815_v54 = vpack.c.bf16 %v364_v49, %v363_v50  ;;  %v361_v55 = vadd.f32 %v352_v51, %v333_v53 }
  0xa7   : > { %v396_v10 = vpop.permute.xlu0 %395 }
  0xa8   : > { %816 = vmatprep.subr.bf16.mxu0 %v815_v54  ;;  %v365_v59 = vmax.f32 %v361_v55, 0.0 }
  0xa9   : > { %v357_v57 = vpop.permute.xlu1 %356  ;;  %818 = vmatpush3.bf16.msra.mxu0 %v815_v54 }
  0xaa   : > { %v362_v58 = vadd.f32 %v357_v57, %v334_v56 }
  0xab   : > { %v406_v22 = vpop.permute.xlu0 %405 }
  0xac   : > { %v366_v60 = vmax.f32 %v362_v58, 0.0 }
  0xad   : > { %v391_v6 = vpop.permute.xlu1 %390 }
  0xae   : > { %v819_v61 = vpack.c.bf16 %v366_v60, %v365_v59 }
  0xaf   : > { %v416_v34 = vpop.permute.xlu0 %415 }
  0xb0   : > { %820 = vmatprep.subr.bf16.mxu0 %v819_v61 }
  0xb1   : > { %822 = vmatpush3.bf16.msra.mxu0 %v819_v61  ;;  %v401_v8 = vpop.permute.xlu1 %400 }
  0xb3   : > { %v568_v45 = vpop.permute.xlu0 %567 }
  0xb4   : > { %785 = vmatmul.mubr.msk.f32.vlgmr.msra.gmra.mrb[0].mxu0 %vm423_vm0, %v368_v62 }
  0xb5   : > { %787 = vmatprep.mubr.msk.f32.mxu0 %vm423_vm0, %v369_v63  ;;  %v411_v19 = vpop.permute.xlu1 %410 }
  0xb8   : > { %788 = vmatmul.mubr.msk.f32.gmra.mrb[2].mxu0 %vm423_vm0, %v370_v0 }
  0xb9   : > { %790 = vmatprep.mubr.msk.f32.mxu0 %vm423_vm0, %v371_v1  ;;  %v421_v31 = vpop.permute.xlu1 %420 }
  0xbc   : > { %791 = vmatmul.mubr.msk.f32.gmra.mrb[4].mxu0 %vm423_vm0, %v372_v2 }
  0xbd   : > { %793 = vmatprep.mubr.msk.f32.mxu0 %vm423_vm0, %v373_v3  ;;  %v573_v43 = vpop.permute.xlu1 %572 }
  0xc0   : > { %794 = vmatmul.mubr.msk.f32.gmra.mrb[6].mxu0 %vm423_vm0, %v374_v4 }
 0x187   : > { %v786_v9 = vpop.f32.mrb[0].mxu0 }
 0x188   : > { %v520_v11 = vadd.f32 %v786_v9, %v391_v6  ;;  %v514_v12 = vpop.f32.mrb[1].mxu0 }
 0x189   : > { %v515_v13 = vadd.f32 %v514_v12, %v386_v7 }
 0x18a   : > { %v554_v14 = vmax.f32 %v520_v11, 0.0 }
 0x18b   : > { %v553_v15 = vmax.f32 %v515_v13, 0.0  ;;  %v789_v16 = vpop.f32.mrb[2].mxu0 }
 0x18c   : > { %v530_v17 = vadd.f32 %v789_v16, %v401_v8  ;;  %v524_v18 = vpop.f32.mrb[3].mxu0 }
 0x18d   : > { %v525_v20 = vadd.f32 %v524_v18, %v396_v10  ;;  %v823_v21 = vpack.c.bf16 %v554_v14, %v553_v15 }
 0x18e   : > { %v556_v23 = vmax.f32 %v530_v17, 0.0 }
 0x18f   : > { %v555_v24 = vmax.f32 %v525_v20, 0.0  ;;  %v792_v25 = vpop.f32.mrb[4].mxu0  ;;  %824 = vmatprep.subr.bf16.mxu1 %v823_v21 }
 0x190   : > { %v540_v26 = vadd.f32 %v792_v25, %v411_v19  ;;  %v534_v27 = vpop.f32.mrb[5].mxu0  ;;  %826 = vmatpush3.bf16.msra.mxu1 %v823_v21 }
 0x191   : > { %v827_v28 = vpack.c.bf16 %v556_v23, %v555_v24  ;;  %v535_v29 = vadd.f32 %v534_v27, %v406_v22 }
 0x192   : > { %v558_v30 = vmax.f32 %v540_v26, 0.0 }
 0x193   : > { %v557_v32 = vmax.f32 %v535_v29, 0.0  ;;  %v795_v33 = vpop.f32.mrb[6].mxu0  ;;  %828 = vmatprep.subr.bf16.mxu1 %v827_v28 }
 0x194   : > { %v550_v35 = vadd.f32 %v795_v33, %v421_v31  ;;  %v544_v36 = vpop.f32.mrb[7].mxu0  ;;  %830 = vmatpush3.bf16.msra.mxu1 %v827_v28 }
 0x195   : > { %v831_v37 = vpack.c.bf16 %v558_v30, %v557_v32  ;;  %v545_v38 = vadd.f32 %v544_v36, %v416_v34 }
 0x196   : > { %v560_v39 = vmax.f32 %v550_v35, 0.0 }
 0x197   : > { %v559_v40 = vmax.f32 %v545_v38, 0.0  ;;  %832 = vmatprep.subr.bf16.mxu1 %v831_v37 }
 0x198   : > { %834 = vmatpush3.bf16.msra.mxu1 %v831_v37 }
 0x199   : > { %v835_v41 = vpack.c.bf16 %v560_v39, %v559_v40 }
 0x19b   : > { %836 = vmatprep.subr.bf16.mxu1 %v835_v41 }
 0x19c   : > { %838 = vmatpush3.bf16.msra.mxu1 %v835_v41 }
 0x19f   : > { %813 = vmatmul.mubr.msk.f32.vlgmr.msra.gmra.mrb[0].mxu1 %vm575_vm1, %v562_v42 }
 0x272   : > { %v814_v44 = vpop.f32.mrb[0].mxu1 }
 0x273   : > { %v654_v46 = vadd.f32 %v814_v44, %v573_v43  ;;  %v648_v47 = vpop.f32.mrb[1].mxu1 }
 0x274   : > { %v649_v48 = vadd.f32 %v648_v47, %v568_v45 }
 0x275   : > { %658 = vst [vmem:[%s269_s20 + $0x8] sm:$0xff] %v654_v46 }
 0x276   : > { %657 = vst [vmem:[%s269_s20] sm:$0xff] %v649_v48 }
 0x277   : > { %902 = shalt.err (!%p899_p3)
}
 0x278   : > { %s903_s16 = scalar_lea.hbm %s1153_s8, 256  ;;  %s907_s19 = scalar_lea.hbm %s1203_s7, 512 }
 0x279   : > { %p904_p4 = scmp.ne.s32.totalorder %s1153_s8, %s903_s16  ;;  %p908_p9 = scmp.lt.u32.totalorder %s1153_s8, %s1203_s7 }
 0x27a   : > { %p909_p10 = scmp.lt.u32.totalorder %s907_s19, %s903_s16  ;;  %p911_p12 = scmp.lt.u32.totalorder %s903_s16, %s1153_s8 }
 0x27b   : > { %p905_p7 = pnand %p904_p4, %p1037_p5 }
 0x27c   : > { %p910_p11 = por %p909_p10, %p908_p9 }
 0x27d   : > { %p906_p8 = pneg %p905_p7 }
 0x27e   : > { %p912_p13 = por %p911_p12, %p910_p11 }
 0x280   : > { %p913_p0 = pnand %p912_p13, %p906_p8 }
 0x282   : > { %916 = shalt.err (!%p913_p0)
}
 0x283   : > { %s956_s23 = smov 128   ;;  %s957_s29 = smov 256  }
 0x284   : > { %s958_s28 = smov 8  }
 0x285   : > { %839 = dma.vmem_to_hbm [thread:$0]  (%p1037_p5), %s1148_s21, 256, %s1153_s8, %s1155_s9, %s956_s23, %s957_s29, %s958_s28  }
 0x286 PF: > { %p845_p1 = scmp.ge.s32.totalorder %s951_s27, 2  ;;  %s687_s13 = sand.u32 1, %s939_s24  }
 0x287   : > { %s688_s14 = scalar_lea.sflag [#allocation3], %s687_s13 }
 0x288   : > { %p842_p2 = pnand %p845_p1, %p1041_p6 }
 0x28a   : > { %934 = dma.done.wait (!%p842_p2), %s688_s14, 256  }
 0x28b   : > { %936 = vsyncadd (!%p842_p2), %s688_s14, 4294967040  ;;  %p17_p3 = scmp.ge.s32.totalorder %s1024_s30, 4   ;;  %s1206_s24 = smov %s943_s25 }
 0x28c   : > { %s1207_s25 = smov %s947_s26  ;;  %s1208_s26 = smov %s1035_s10 }
 0x28d   : > { %s1209_s27 = smov %s1024_s30  ;;  %19 = sbr.rel (!%p17_p3) target bundleno = 3 (0x3), region = 83 }
 0x294   :  { %693 = vsyncpa [#allocation3], 1 }
 0x295   :  { %695 = vsyncpa [#allocation3 + $0x1], 1 }

</bundles_post_ra>
